<compile_context>
chip_gen: v6e
topology: v6e:2x2x1
jax: 0.10.0
libtpu: 0.0.40
codegen_flags: <defaults>
</compile_context>

<pallas_src>
import jax
import jax.numpy as jnp
from jax.experimental import pallas as pl
from jax.experimental.pallas import tpu as pltpu


def _mlp_kernel(x_ref, w1_ref, b1_ref, w2_ref, b2_ref, o_ref):
    # x: (TB, D); w1: (D, HP); b1: (1, HP); w2: (HP, OP); b2: (1, OP); o: (TB, out_dim)
    x = x_ref[...]
    h = jnp.dot(x, w1_ref[...], preferred_element_type=jnp.float32)       # MXU, f32 acc
    h = jnp.maximum(h + b1_ref[...].astype(jnp.float32), 0.0)             # f32 bias + ReLU
    # One extra rounding step vs. a pure-f32 reference when weights are bf16 (documented).
    y = jnp.dot(h.astype(w2_ref.dtype), w2_ref[...],
                preferred_element_type=jnp.float32)                        # MXU, f32 acc
    y = y + b2_ref[...].astype(jnp.float32)
    # Lane-dense math above; only the real logit lanes are stored (masked narrow vst,
    # hidden under the input DMA).
    o_ref[...] = y[:, :o_ref.shape[1]].astype(o_ref.dtype)


def _round_up(n, m):
    return ((n + m - 1) // m) * m


def pad_params(w1, b1, w2, b2):
    """One-time zero-padding of the params to lane-dense shapes (hidden 64->128, out 2->128).

    ReLU(0) = 0 and zero columns contribute nothing, so semantics are preserved exactly.
    Call this once and reuse the result so the padding traffic stays out of the hot path.
    """
    D, H = w1.shape
    O = w2.shape[1]
    HP = _round_up(max(H, 128), 128)
    OP = 128
    w1p = jnp.zeros((D, HP), w1.dtype).at[:, :H].set(w1)
    b1p = jnp.zeros((1, HP), b1.dtype).at[:, :H].set(jnp.reshape(b1, (1, H)))
    w2p = jnp.zeros((HP, OP), w2.dtype).at[:H, :O].set(w2)
    b2p = jnp.zeros((1, OP), b2.dtype).at[:, :O].set(jnp.reshape(b2, (1, O)))
    return w1p, b1p, w2p, b2p


def _pick_batch_tile(B, D, x_itemsize, w_itemsize, HP, OP, out_dim, tile_b):
    """Pick TB and an explicit scoped-VMEM limit.

    Budget = 2x (TB, D) x-tile (double-buffered input stream)
           + 2x (TB, out_dim) f32 out-tile
           + 2x weights/biases (constant index_map -> DMA'd once, but 2 buffers are allocated)
           + ~3x (TB, HP) f32 body temporaries (h, y, slack).
    Kept under ~24 MiB so the limit we request stays safe on v7x's 64 MiB physical VMEM.
    """
    budget = 24 * 1024 * 1024
    weights = 2 * (D * HP + HP + HP * OP + OP) * w_itemsize
    per_row = 2 * D * x_itemsize + 2 * out_dim * 4 + 3 * HP * 4
    avail = max(budget - weights, 2 * 1024 * 1024)
    cap = max(8, (avail // per_row) // 8 * 8)
    tb = int(min(tile_b, cap))

    if B <= tb:
        # Whole batch in one tile: block dims equal the full array dims (no partial block).
        tb = int(B)
    elif B > 8 * tb:
        pass  # already >= 8 grid steps with a full-size tile
    elif B > 8 * 512:
        # Keep >= ~8 grid steps so both v7x TensorCores get work and pipelining has depth.
        tb = int(min(tb, _round_up(pl.cdiv(B, 8), 8)))

    vmem_need = (2 * tb * D * x_itemsize + 2 * tb * out_dim * 4
                 + weights + 3 * tb * HP * 4)
    vmem_limit = int(min(60 * 1024 * 1024, max(32 * 1024 * 1024, 2 * vmem_need)))
    return tb, vmem_limit


def domain_discriminator_padded(x, w1p, b1p, w2p, b2p, *, out_dim=2, tile_b=2048):
    """x: [B, D]; padded params from pad_params(); returns [B, out_dim] f32 logits."""
    B, D = x.shape
    HP = w1p.shape[1]
    OP = w2p.shape[1]

    TB, vmem_limit = _pick_batch_tile(B, D, x.dtype.itemsize, w1p.dtype.itemsize,
                                      HP, OP, out_dim, tile_b)
    grid = (pl.cdiv(B, TB),)  # ragged last tile handled by Pallas; masked output store

    return pl.pallas_call(
        _mlp_kernel,
        out_shape=jax.ShapeDtypeStruct((B, out_dim), jnp.float32),
        grid=grid,
        in_specs=[
            pl.BlockSpec((TB, D), lambda i: (i, 0)),      # x: streamed per batch tile
            pl.BlockSpec((D, HP), lambda i: (0, 0)),      # w1: VMEM-resident
            pl.BlockSpec((1, HP), lambda i: (0, 0)),      # b1: VMEM-resident
            pl.BlockSpec((HP, OP), lambda i: (0, 0)),     # w2: VMEM-resident
            pl.BlockSpec((1, OP), lambda i: (0, 0)),      # b2: VMEM-resident
        ],
        out_specs=pl.BlockSpec((TB, out_dim), lambda i: (i, 0)),  # narrow (B, 2) output
        compiler_params=pltpu.CompilerParams(
            dimension_semantics=("parallel",),            # v7x: shard batch tiles across 2 TCs
            vmem_limit_bytes=vmem_limit,
        ),
    )(x, w1p, b1p, w2p, b2p)


def domain_discriminator(x, w1, b1, w2, b2, *, tile_b=2048):
    """Convenience wrapper (pads params each call). For hot loops, pad once with pad_params()
    and call domain_discriminator_padded directly."""
    w1p, b1p, w2p, b2p = pad_params(w1, b1, w2, b2)
    return domain_discriminator_padded(x, w1p, b1p, w2p, b2p,
                                       out_dim=w2.shape[1], tile_b=tile_b)


def init_params(key, input_dim, hidden=64, out_dim=2, dtype=jnp.float32):
    # Deterministic synthetic init (Kaiming-uniform-ish, like nn.Linear defaults).
    k1, k2, k3, k4 = jax.random.split(key, 4)
    bound1 = 1.0 / jnp.sqrt(input_dim)
    bound2 = 1.0 / jnp.sqrt(hidden)
    w1 = jax.random.uniform(k1, (input_dim, hidden), jnp.float32, -bound1, bound1).astype(dtype)
    b1 = jax.random.uniform(k2, (1, hidden), jnp.float32, -bound1, bound1).astype(dtype)
    w2 = jax.random.uniform(k3, (hidden, out_dim), jnp.float32, -bound2, bound2).astype(dtype)
    b2 = jax.random.uniform(k4, (1, out_dim), jnp.float32, -bound2, bound2).astype(dtype)
    return w1, b1, w2, b2


def _reference(x, w1, b1, w2, b2):
    xf = x.astype(jnp.float32)
    h = jnp.maximum(xf @ w1.astype(jnp.float32) + b1.astype(jnp.float32), 0.0)
    return h @ w2.astype(jnp.float32) + b2.astype(jnp.float32)


if __name__ == "__main__":
    key = jax.random.PRNGKey(0)
    kx, kp, kx2, kp2 = jax.random.split(key, 4)

    # Case 1: small shape consistent with Linear(input_dim=32, 64) -> ReLU -> Linear(64, 2), f32.
    B, D = 2, 32
    x = jax.random.normal(kx, (B, D), jnp.float32)
    w1, b1, w2, b2 = init_params(kp, D)
    w1p, b1p, w2p, b2p = pad_params(w1, b1, w2, b2)          # pad once, outside the hot path
    out = jax.block_until_ready(
        domain_discriminator_padded(x, w1p, b1p, w2p, b2p, out_dim=2))
    ref = _reference(x, w1, b1, w2, b2)
    assert out.shape == (B, 2)
    assert jnp.allclose(out, ref, atol=1e-5, rtol=1e-5)

    # Case 2: ragged batch (no pre-pad copy) + bf16 inputs (halved HBM traffic, f32 accumulation).
    B2, D2 = 1000, 256
    x2 = jax.random.normal(kx2, (B2, D2), jnp.float32).astype(jnp.bfloat16)
    w1b, b1b, w2b, b2b = init_params(kp2, D2, dtype=jnp.bfloat16)
    out2 = jax.block_until_ready(domain_discriminator(x2, w1b, b1b, w2b, b2b))
    ref2 = _reference(x2, w1b, b1b, w2b, b2b)
    assert out2.shape == (B2, 2)
    assert jnp.allclose(out2, ref2, atol=0.1, rtol=0.1)

    print("KERNEL_OK")
</pallas_src>

<mosaic_0001>
module attributes {stable_mosaic.version = 11 : i64} {
  func.func @_mlp_kernel(%arg0: i32, %arg1: memref<2x32xf32, #tpu.memory_space<vmem>>, %arg2: memref<32x128xf32, #tpu.memory_space<vmem>>, %arg3: memref<1x128xf32, #tpu.memory_space<vmem>>, %arg4: memref<128x128xf32, #tpu.memory_space<vmem>>, %arg5: memref<1x128xf32, #tpu.memory_space<vmem>>, %arg6: memref<2x2xf32, #tpu.memory_space<vmem>>) attributes {dimension_semantics = [#tpu.dimension_semantics<parallel>], iteration_bounds = array<i64: 1>, scalar_prefetch = 0 : i64, scratch_operands = 0 : i64, tpu.core_type = #tpu.core_type<tc>, window_params = [{transform_indices = @transform_0, window_bounds = array<i64: 2, 32>}, {pipeline_mode = #tpu.pipeline_mode<synchronous>, transform_indices = @transform_1, window_bounds = array<i64: 32, 128>}, {pipeline_mode = #tpu.pipeline_mode<synchronous>, transform_indices = @transform_2, window_bounds = array<i64: 1, 128>}, {pipeline_mode = #tpu.pipeline_mode<synchronous>, transform_indices = @transform_3, window_bounds = array<i64: 128, 128>}, {pipeline_mode = #tpu.pipeline_mode<synchronous>, transform_indices = @transform_4, window_bounds = array<i64: 1, 128>}, {transform_indices = @transform_5, window_bounds = array<i64: 2, 2>}]} {
    %c0 = arith.constant 0 : index
    %c0_0 = arith.constant 0 : index
    %0 = vector.load %arg1[%c0, %c0_0] : memref<2x32xf32, #tpu.memory_space<vmem>>, vector<2x32xf32>
    %c0_1 = arith.constant 0 : index
    %c0_2 = arith.constant 0 : index
    %1 = vector.load %arg2[%c0_1, %c0_2] : memref<32x128xf32, #tpu.memory_space<vmem>>, vector<32x128xf32>
    %cst = arith.constant dense<0.000000e+00> : vector<2x128xf32>
    %2 = tpu.matmul %0, %1, %cst {dimension_numbers = #tpu.dot_dimension_numbers<[1], [0], [0], [1], [0, 0, 1, 1], [], []>} : vector<2x32xf32>, vector<32x128xf32>, vector<2x128xf32> -> vector<2x128xf32>
    %c0_3 = arith.constant 0 : index
    %c0_4 = arith.constant 0 : index
    %3 = vector.load %arg3[%c0_3, %c0_4] : memref<1x128xf32, #tpu.memory_space<vmem>>, vector<1x128xf32>
    %4 = vector.broadcast %3 : vector<1x128xf32> to vector<2x128xf32>
    %5 = arith.addf %2, %4 : vector<2x128xf32>
    %cst_5 = arith.constant 0.000000e+00 : f32
    %6 = vector.broadcast %cst_5 : f32 to vector<2x128xf32>
    %7 = arith.maximumf %5, %6 : vector<2x128xf32>
    %c0_6 = arith.constant 0 : index
    %c0_7 = arith.constant 0 : index
    %8 = vector.load %arg4[%c0_6, %c0_7] : memref<128x128xf32, #tpu.memory_space<vmem>>, vector<128x128xf32>
    %cst_8 = arith.constant dense<0.000000e+00> : vector<2x128xf32>
    %9 = tpu.matmul %7, %8, %cst_8 {dimension_numbers = #tpu.dot_dimension_numbers<[1], [0], [0], [1], [0, 0, 1, 1], [], []>} : vector<2x128xf32>, vector<128x128xf32>, vector<2x128xf32> -> vector<2x128xf32>
    %c0_9 = arith.constant 0 : index
    %c0_10 = arith.constant 0 : index
    %10 = vector.load %arg5[%c0_9, %c0_10] : memref<1x128xf32, #tpu.memory_space<vmem>>, vector<1x128xf32>
    %11 = vector.broadcast %10 : vector<1x128xf32> to vector<2x128xf32>
    %12 = arith.addf %9, %11 : vector<2x128xf32>
    %13 = vector.extract_strided_slice %12 {offsets = [0, 0], sizes = [2, 2], strides = [1, 1]} : vector<2x128xf32> to vector<2x2xf32>
    %c0_11 = arith.constant 0 : index
    %c0_12 = arith.constant 0 : index
    %14 = vector.load %arg6[%c0_11, %c0_12] : memref<2x2xf32, #tpu.memory_space<vmem>>, vector<2x2xf32>
    tpu.vector_store %arg6[%c0_11, %c0_12], %13 {strides = array<i32>} : memref<2x2xf32, #tpu.memory_space<vmem>>, vector<2x2xf32>,
    return
  }
  func.func @transform_0(%arg0: i32) -> (i32, i32) {
    %c0_i32 = arith.constant 0 : i32
    %c0_i32_0 = arith.constant 0 : i32
    return %arg0, %c0_i32 : i32, i32
  }
  func.func @transform_1(%arg0: i32) -> (i32, i32) {
    %c0_i32 = arith.constant 0 : i32
    %c0_i32_0 = arith.constant 0 : i32
    %c0_i32_1 = arith.constant 0 : i32
    return %c0_i32, %c0_i32_0 : i32, i32
  }
  func.func @transform_2(%arg0: i32) -> (i32, i32) {
    %c0_i32 = arith.constant 0 : i32
    %c0_i32_0 = arith.constant 0 : i32
    %c0_i32_1 = arith.constant 0 : i32
    return %c0_i32, %c0_i32_0 : i32, i32
  }
  func.func @transform_3(%arg0: i32) -> (i32, i32) {
    %c0_i32 = arith.constant 0 : i32
    %c0_i32_0 = arith.constant 0 : i32
    %c0_i32_1 = arith.constant 0 : i32
    return %c0_i32, %c0_i32_0 : i32, i32
  }
  func.func @transform_4(%arg0: i32) -> (i32, i32) {
    %c0_i32 = arith.constant 0 : i32
    %c0_i32_0 = arith.constant 0 : i32
    %c0_i32_1 = arith.constant 0 : i32
    return %c0_i32, %c0_i32_0 : i32, i32
  }
  func.func @transform_5(%arg0: i32) -> (i32, i32) {
    %c0_i32 = arith.constant 0 : i32
    %c0_i32_0 = arith.constant 0 : i32
    return %arg0, %c0_i32 : i32, i32
  }
}

</mosaic_0001>

<bundles_post_ra>
// kernel: tpu_custom_call.1
= control target key start
LH: loop header
LB: loop body
LE: loop exit
PB: predicated region body
PF: predicated region fallthrough
CT: control target
= control target key end

     0   :  { %10 = vsyncpa [#allocation3], 0  ;;  %s501_s0 = inlined_call_operand.hbm [shape: f32[2,32], index: 0, kind: input, shape index: {}]   ;;  %s502_s1 = inlined_call_operand.hbm [shape: f32[32,128], index: 1, kind: input, shape index: {}]   ;;  %s503_s2 = inlined_call_operand.vmem [shape: f32[1,128], index: 2, kind: input, shape index: {}]   ;;  %s504_s3 = inlined_call_operand.hbm [shape: f32[128,128], index: 3, kind: input, shape index: {}]   ;;  %s505_s4 = inlined_call_operand.vmem [shape: f32[1,128], index: 4, kind: input, shape index: {}]   ;;  %s506_s5 = inlined_call_operand.hbm [shape: f32[2,2], index: 5, kind: output, shape index: {}]  }
   0x1   :  { %11 = vsyncpa [#allocation6], 0 }
   0x2   :  { %12 = vsyncpa [#allocation4], 0  ;;  %s423_s18 = smov [#allocation5]  }
   0x3   :  { %s28_s19 = sshll.u32 %s423_s18, 4  ;;  %s29_s19 = int_to_ptr.vmem [resolvable:$true] %s28_s19 }
   0x4   :  { %s345_s20 = scalar_lea.vmem %s29_s19, 512  ;;  %p350_p1 = scmp.lt.s32.totalorder %s29_s19, %s29_s19 }
   0x5   :  { %p346_p0 = scmp.ne.s32.totalorder %s29_s19, %s345_s20  ;;  %p351_p2 = scmp.lt.s32.totalorder %s345_s20, %s345_s20 }
   0x7   :  { %p352_p3 = por %p351_p2, %p350_p1 }
   0x9   :  { %p353_p4 = pnand %p352_p3, %p346_p0 }
   0xb   :  { %356 = shalt.err (!%p353_p4)
}
   0xc   :  { %s424_s21 = smov 128   ;;  %s425_s22 = smov 8  }
   0xd   :  { %34 = dma.hbm_to_vmem [thread:$0]  %s502_s1, 512, %s29_s19, [#allocation6], %s424_s21, %s424_s21, %s425_s22  }
   0xe   :  { %s426_s25 = smov [#allocation2]   ;;  %s427_s27 = smov [#allocation7]  }
   0xf   :  { %s19_s26 = sshll.u32 %s426_s25, 4  ;;  %s42_s28 = sshll.u32 %s427_s27, 4  ;;  %s20_s26 = int_to_ptr.vmem [resolvable:$true] %s19_s26  ;;  %s43_s28 = int_to_ptr.vmem [resolvable:$true] %s42_s28 }
  0x10   :  { %s365_s29 = scalar_lea.vmem %s20_s26, 32  ;;  %p370_p6 = scmp.lt.s32.totalorder %s20_s26, %s20_s26 }
  0x11   :  { %p366_p5 = scmp.ne.s32.totalorder %s20_s26, %s365_s29  ;;  %p371_p7 = scmp.lt.s32.totalorder %s365_s29, %s365_s29 }
  0x13   :  { %p372_p8 = por %p371_p7, %p370_p6 }
  0x15   :  { %p373_p9 = pnand %p372_p8, %p366_p5 }
  0x17   :  { %376 = shalt.err (!%p373_p9)
}
  0x18   :  { %22 = dma.hbm_to_vmem [thread:$0]  %s501_s0, 32, %s20_s26, [#allocation3]  }
  0x19   :  { %s385_s7 = scalar_lea.vmem %s43_s28, 2048  ;;  %p390_p11 = scmp.lt.s32.totalorder %s43_s28, %s43_s28 }
  0x1a   :  { %p386_p10 = scmp.ne.s32.totalorder %s43_s28, %s385_s7  ;;  %p391_p12 = scmp.lt.s32.totalorder %s385_s7, %s385_s7 }
  0x1c   :  { %p392_p13 = por %p391_p12, %p390_p11 }
  0x1e   :  { %p393_p0 = pnand %p392_p13, %p386_p10 }
  0x20   :  { %396 = shalt.err (!%p393_p0)
}
  0x21   :  { %48 = dma.hbm_to_vmem [thread:$0]  %s504_s3, 2048, %s43_s28, [#allocation6], %s424_s21, %s424_s21, %s425_s22  }
  0x22   :  { %417 = dma.done.wait [#allocation3], 32  }
  0x23   :  { %418 = vsyncadd [#allocation3], 4294967264 }
  0x24   :  { %419 = dma.done.wait [#allocation6], 2560  }
  0x25   :  { %420 = vsyncadd [#allocation6], 4294964736  ;;  %v428_v0 = vmov 0.0   ;;  %vm429_vm0 = vmmov 0   ;;  %v64_v1 = vld [vmem:[#allocation5 + $0x18] sm:$0xff]  ;;  %v63_v2 = vld [vmem:[#allocation5 + $0x10] sm:$0xff] }
  0x26   :  { %283 = vmatprep.subr.mxu0 %v428_v0  ;;  %291 = vmatprep.mubr.msk.f32.mxu0 %vm429_vm0, %v428_v0  ;;  %v162_v3 = vld [vmem:[#allocation7 + $0x78] sm:$0xff]  ;;  %v62_v4 = vld [vmem:[#allocation5 + $0x8] sm:$0xff]  ;;  %v161_v5 = vld [vmem:[#allocation7 + $0x70] sm:$0xff]  ;;  %vm72_vm1 = vcmask 261120   ;;  %s430_s11 = smov [#allocation8]   ;;  %vm240_vm2 = vcmask 9216  }
  0x27   :  { %294 = vmatprep.subr.mxu1 %v428_v0  ;;  %326 = vmatprep.mubr.msk.f32.mxu1 %vm429_vm0, %v428_v0  ;;  %v160_v6 = vld [vmem:[#allocation7 + $0x68] sm:$0xff]  ;;  %v61_v7 = vld [vmem:[#allocation5] sm:$0xff]  ;;  %v60_v8 = vld [vmem:[#allocation2] sm:$0x3]  ;;  %s248_s12 = sshll.u32 %s430_s11, 4  ;;  %s249_s12 = int_to_ptr.vmem [resolvable:$true] %s248_s12 }
  0x28   :  { %284 = vmatpush3.msra.mxu0 %v64_v1  ;;  %295 = vmatpush3.msra.mxu1 %v162_v3  ;;  %v159_v9 = vld [vmem:[#allocation7 + $0x60] sm:$0xff]  ;;  %v158_v10 = vld [vmem:[#allocation7 + $0x58] sm:$0xff]  ;;  %v157_v11 = vld [vmem:[#allocation7 + $0x50] sm:$0xff]  ;;  %s397_s13 = scalar_lea.vmem %s249_s12, 32  ;;  %p402_p2 = scmp.lt.s32.totalorder %s249_s12, %s249_s12 }
  0x29   :  { %285 = vmatprep.subr.mxu0 %v428_v0  ;;  %296 = vmatprep.subr.mxu1 %v428_v0  ;;  %v156_v12 = vld [vmem:[#allocation7 + $0x48] sm:$0xff]  ;;  %v155_v13 = vld [vmem:[#allocation7 + $0x40] sm:$0xff]  ;;  %v154_v14 = vld [vmem:[#allocation7 + $0x38] sm:$0xff]  ;;  %p398_p1 = scmp.ne.s32.totalorder %s249_s12, %s397_s13  ;;  %p403_p3 = scmp.lt.s32.totalorder %s397_s13, %s397_s13 }
  0x2a   :  { %286 = vmatpush3.msra.mxu0 %v63_v2  ;;  %297 = vmatpush3.msra.mxu1 %v161_v5  ;;  %v153_v15 = vld [vmem:[#allocation7 + $0x30] sm:$0xff]  ;;  %v152_v16 = vld [vmem:[#allocation7 + $0x28] sm:$0xff]  ;;  %v151_v17 = vld [vmem:[#allocation7 + $0x20] sm:$0xff] }
  0x2b   :  { %287 = vmatprep.subr.mxu0 %v428_v0  ;;  %298 = vmatprep.subr.mxu1 %v428_v0  ;;  %v150_v18 = vld [vmem:[#allocation7 + $0x18] sm:$0xff]  ;;  %v149_v19 = vld [vmem:[#allocation7 + $0x10] sm:$0xff]  ;;  %v148_v20 = vld [vmem:[#allocation7 + $0x8] sm:$0xff]  ;;  %p404_p4 = por %p403_p3, %p402_p2 }
  0x2c   :  { %288 = vmatpush3.msra.mxu0 %v62_v4  ;;  %299 = vmatpush3.msra.mxu1 %v160_v6  ;;  %v147_v21 = vld [vmem:[#allocation7] sm:$0xff]  ;;  %v258_v22 = vld [vmem:[%s503_s2] ss:$0 sm:$0xff] }
  0x2d   :  { %289 = vmatprep.subr.mxu0 %v428_v0  ;;  %300 = vmatprep.subr.mxu1 %v428_v0  ;;  %v260_v27 = vld [vmem:[%s505_s4] ss:$0 sm:$0xff]  ;;  %p405_p5 = pnand %p404_p4, %p398_p1 }
  0x2e   :  { %290 = vmatpush3.msra.mxu0 %v61_v7  ;;  %301 = vmatpush3.msra.mxu1 %v159_v9 }
  0x2f   :  { %292 = vmatmul.mubr.msk.f32.vlgmr.msra.gmra.mxu0 %vm72_vm1, %v60_v8  ;;  %302 = vmatprep.subr.mxu1 %v428_v0 }
  0x30   :  { %303 = vmatpush3.msra.mxu1 %v158_v10 }
  0x31   :  { %304 = vmatprep.subr.mxu1 %v428_v0 }
  0x32   :  { %305 = vmatpush3.msra.mxu1 %v157_v11 }
  0x33   :  { %306 = vmatprep.subr.mxu1 %v428_v0 }
  0x34   :  { %307 = vmatpush3.msra.mxu1 %v156_v12 }
  0x35   :  { %308 = vmatprep.subr.mxu1 %v428_v0 }
  0x36   :  { %309 = vmatpush3.msra.mxu1 %v155_v13 }
  0x37   :  { %310 = vmatprep.subr.mxu1 %v428_v0 }
  0x38   :  { %311 = vmatpush3.msra.mxu1 %v154_v14 }
  0x39   :  { %312 = vmatprep.subr.mxu1 %v428_v0 }
  0x3a   :  { %313 = vmatpush3.msra.mxu1 %v153_v15 }
  0x3b   :  { %314 = vmatprep.subr.mxu1 %v428_v0 }
  0x3c   :  { %315 = vmatpush3.msra.mxu1 %v152_v16 }
  0x3d   :  { %316 = vmatprep.subr.mxu1 %v428_v0 }
  0x3e   :  { %317 = vmatpush3.msra.mxu1 %v151_v17 }
  0x3f   :  { %318 = vmatprep.subr.mxu1 %v428_v0 }
  0x40   :  { %319 = vmatpush3.msra.mxu1 %v150_v18 }
  0x41   :  { %320 = vmatprep.subr.mxu1 %v428_v0 }
  0x42   :  { %321 = vmatpush3.msra.mxu1 %v149_v19 }
  0x43   :  { %322 = vmatprep.subr.mxu1 %v428_v0 }
  0x44   :  { %323 = vmatpush3.msra.mxu1 %v148_v20 }
  0x45   :  { %324 = vmatprep.subr.mxu1 %v428_v0 }
  0x46   :  { %325 = vmatpush3.msra.mxu1 %v147_v21 }
  0xef   :  { %v142_v23 = vpop.f32.mrf.mxu0 }
  0xf0   :  { %v143_v24 = vadd.f32 %v258_v22, %v142_v23 }
  0xf1   :  { %v293_v25 = vpop.f32.mrf.mxu0 }
  0xf2   :  { %v146_v26 = vmax.f32 %v143_v24, 0.0 }
  0xf4   :  { %327 = vmatmul.mubr.f32.vlgmr.msra.gmra.mxu1 %v146_v26 }
 0x1b4   :  { %v236_v28 = vpop.f32.mrf.mxu1 }
 0x1b5   :  { %v237_v29 = vadd.f32 %v260_v27, %v236_v28 }
 0x1b6   :  { %v328_v30 = vpop.f32.mrf.mxu1 }
 0x1b7   :  { %241 = vst.msk [vmem:[#allocation8] sm:$0x3] %vm240_vm2, %v237_v29 }
 0x1b8   :  { %408 = shalt.err (!%p405_p5)
}
 0x1b9   :  { %251 = dma.vmem_to_hbm [thread:$0]  %s249_s12, 32, %s506_s5, [#allocation4]  }
 0x1ba   :  { %421 = dma.done.wait [#allocation4], 32  }
 0x1bb   :  { %422 = vsyncadd [#allocation4], 4294967264 }
 0x1bc   :  { %255 = vsyncpa [#allocation3], 1 }
 0x1bd   :  { %256 = vsyncpa [#allocation6], 1 }
 0x1be   :  { %257 = vsyncpa [#allocation4], 1 }

</bundles_post_ra>
